<compile_context>
chip_gen: v7x
topology: tpu7x:2x2x1
jax: 0.10.0
libtpu: 0.0.40
codegen_flags: <defaults>
</compile_context>

<pallas_src>
import jax
import jax.numpy as jnp
from jax.experimental import pallas as pl
from jax.experimental.pallas import tpu as pltpu

LANE = 128          # TPU lane width: hidden/output feature dims are padded to this
SUBLANE_BF16 = 16   # bf16 sublane packing: the tiny state_dim is padded to this


def _round_up(n, m):
    return ((n + m - 1) // m) * m


def qnet_kernel(x_ref, w1_ref, w23_ref, b_ref, o_ref):
    # x_ref   : (TB, SD_PAD)       bf16 batch tile (state features, zero padded)
    # w1_ref  : (SD_PAD, LANE)     bf16 W1 (in, out), zero padded
    # w23_ref : (2, LANE, LANE)    bf16 [W2; W3], each (in, out), zero padded
    # b_ref   : (8, LANE)          f32 rows 0..2 hold b1, b2, b3 (zero padded)
    # o_ref   : (TB, action_dim)   f32 narrow output tile
    x = x_ref[...]

    # Hidden layer 1: relu(x @ W1 + b1)   (bf16 MXU, f32 accumulate)
    h1 = jnp.dot(x, w1_ref[...], preferred_element_type=jnp.float32)
    h1 = jnp.maximum(h1 + b_ref[0:1, :], 0.0).astype(jnp.bfloat16)

    # Hidden layer 2: relu(h1 @ W2 + b2)
    h2 = jnp.dot(h1, w23_ref[0], preferred_element_type=jnp.float32)
    h2 = jnp.maximum(h2 + b_ref[1:2, :], 0.0).astype(jnp.bfloat16)

    # Output layer: h2 @ W3 + b3  (no activation)
    out = jnp.dot(h2, w23_ref[1], preferred_element_type=jnp.float32)
    out = out + b_ref[2:3, :]

    # Narrow store: only action_dim lanes go back to HBM (masked vst, but far
    # less writeback than a lane-dense slab + wrapper slice).
    o_ref[...] = out[:, : o_ref.shape[-1]].astype(o_ref.dtype)
    # TODO(synk): if the consumer is argmax / TD-target gather, fuse it here
    # (mask padded batch rows first) so even this small slab never hits HBM.


def pack_qnet_params(w1, b1, w2, b2, w3, b3):
    """Pack (in, out) weights / biases into the kernel's resident layout.

    Call ONCE (or only when params change), NOT on every forward call.
    Returns (w1p bf16, w23p bf16, b_pack f32).
    """
    state_dim, hidden = w1.shape
    hidden2 = w2.shape[1]
    action_dim = w3.shape[1]
    assert max(state_dim, hidden, hidden2, action_dim) <= LANE, (
        "this packing assumes every feature dim fits in one 128-lane tile")
    sd_pad = _round_up(state_dim, SUBLANE_BF16)

    w1p = (jnp.zeros((sd_pad, LANE), jnp.float32)
           .at[:state_dim, :hidden].set(w1).astype(jnp.bfloat16))
    w23p = jnp.stack([
        jnp.zeros((LANE, LANE), jnp.float32).at[:hidden, :hidden2].set(w2),
        jnp.zeros((LANE, LANE), jnp.float32).at[:hidden2, :action_dim].set(w3),
    ]).astype(jnp.bfloat16)

    b_pack = jnp.zeros((8, LANE), jnp.float32)
    b_pack = b_pack.at[0, :hidden].set(b1.reshape(-1))
    b_pack = b_pack.at[1, :hidden2].set(b2.reshape(-1))
    b_pack = b_pack.at[2, :action_dim].set(b3.reshape(-1))
    return w1p, w23p, b_pack


def _choose_tile(B, block_rows):
    """Balanced batch tiles: waste < 8 rows per tile, >=2 tiles when worth it."""
    num_tiles = pl.cdiv(B, block_rows)
    # v7x has 2 TensorCores; give the "parallel" batch axis at least 2 tiles
    # once each tile is still large enough to amortize the per-step overhead.
    if B >= 512:
        num_tiles = max(num_tiles, 2)
    tb = _round_up(pl.cdiv(B, num_tiles), 8)
    b_pad = _round_up(B, tb)
    return tb, b_pad


def qnet_forward(x, w1p, w23p, b_pack, *, action_dim, block_rows=1024):
    """x: (B, state_dim). Packed params from pack_qnet_params.

    Returns (B, action_dim) f32 with the same semantics as the PyTorch forward
    (bf16 matmul operands, f32 accumulation / bias / ReLU).
    """
    B, state_dim = x.shape
    sd_pad = w1p.shape[0]
    assert state_dim <= sd_pad, "x feature dim does not match packed params"

    tb, b_pad = _choose_tile(B, block_rows)

    # Only row padding plus the tiny state-feature pad (no 128-wide x slab).
    if (b_pad, sd_pad) != (B, state_dim):
        x = jnp.pad(x, ((0, b_pad - B), (0, sd_pad - state_dim)))
    x = x.astype(jnp.bfloat16)

    grid = (b_pad // tb,)

    # Realistic advisory cost: actual in-kernel MXU work and the compact HBM
    # bytes actually moved (no lane-padding inflation).
    flops = 2 * b_pad * (sd_pad * LANE + 2 * LANE * LANE)
    bytes_accessed = (x.size * 2 + w1p.size * 2 + w23p.size * 2
                      + b_pack.size * 4 + b_pad * action_dim * 4)

    out = pl.pallas_call(
        qnet_kernel,
        out_shape=jax.ShapeDtypeStruct((b_pad, action_dim), jnp.float32),
        grid_spec=pltpu.PrefetchScalarGridSpec(
            num_scalar_prefetch=0,
            grid=grid,
            in_specs=[
                # activations: tiled along the (parallel) batch axis
                pl.BlockSpec((tb, sd_pad), lambda i: (i, 0)),
                # parameters: constant index_map -> fetched once, stay resident
                pl.BlockSpec((sd_pad, LANE), lambda i: (0, 0)),
                pl.BlockSpec((2, LANE, LANE), lambda i: (0, 0, 0)),
                pl.BlockSpec((8, LANE), lambda i: (0, 0)),
            ],
            out_specs=pl.BlockSpec((tb, action_dim), lambda i: (i, 0)),
        ),
        compiler_params=pltpu.CompilerParams(
            # batch axis is independent -> shard across TensorCores on v7x
            dimension_semantics=("parallel",),
        ),
        cost_estimate=pl.CostEstimate(
            flops=flops, transcendentals=0, bytes_accessed=bytes_accessed),
    )(x, w1p, w23p, b_pack)

    return out if b_pad == B else out[:B]


def init_params(key, state_dim, hidden_dim, action_dim):
    """Deterministic init mimicking torch.nn.Linear: U(-1/sqrt(fan_in), +)."""
    keys = jax.random.split(key, 6)

    def linear(kw, kb, fan_in, fan_out):
        bound = 1.0 / jnp.sqrt(float(fan_in))
        # Weight stored already transposed: (in, out) so the kernel does x @ W.
        w = jax.random.uniform(kw, (fan_in, fan_out), jnp.float32, -bound, bound)
        b = jax.random.uniform(kb, (fan_out,), jnp.float32, -bound, bound)
        return w, b

    w1, b1 = linear(keys[0], keys[1], state_dim, hidden_dim)
    w2, b2 = linear(keys[2], keys[3], hidden_dim, hidden_dim // 2)
    w3, b3 = linear(keys[4], keys[5], hidden_dim // 2, action_dim)
    return w1, b1, w2, b2, w3, b3


if __name__ == "__main__":
    state_dim, hidden_dim, action_dim = 4, 32, 2
    batch = 8

    key = jax.random.PRNGKey(0)
    k_x, k_p = jax.random.split(key)
    x = jax.random.normal(k_x, (batch, state_dim), dtype=jnp.float32)
    w1, b1, w2, b2, w3, b3 = init_params(k_p, state_dim, hidden_dim, action_dim)

    # Pack parameters once; jit the forward (dims are static arguments).
    w1p, w23p, b_pack = pack_qnet_params(w1, b1, w2, b2, w3, b3)
    fwd = jax.jit(qnet_forward, static_argnames=("action_dim", "block_rows"))

    out = fwd(x, w1p, w23p, b_pack, action_dim=action_dim)
    out = jax.block_until_ready(out)

    # Reference 1: same bf16-operand / f32-accumulate recipe as the kernel.
    def ref_bf16(xx):
        c = lambda a: a.astype(jnp.bfloat16)
        h = jnp.dot(c(xx), c(w1), preferred_element_type=jnp.float32)
        h = jnp.maximum(h + b1, 0.0)
        h = jnp.dot(c(h), c(w2), preferred_element_type=jnp.float32)
        h = jnp.maximum(h + b2, 0.0)
        return jnp.dot(c(h), c(w3), preferred_element_type=jnp.float32) + b3

    # Reference 2: plain f32 forward (same semantics as the PyTorch module).
    def ref_f32(xx):
        h = jnp.maximum(xx @ w1 + b1, 0.0)
        h = jnp.maximum(h @ w2 + b2, 0.0)
        return h @ w3 + b3

    assert out.shape == (batch, action_dim)
    assert jnp.allclose(out, ref_bf16(x), atol=2e-3, rtol=2e-3), "bf16-matched mismatch"
    assert jnp.allclose(out, ref_f32(x), atol=5e-2, rtol=5e-2), "f32 reference mismatch"

    print("KERNEL_OK")
</pallas_src>

<mosaic_0001>
module attributes {stable_mosaic.version = 11 : i64} {
  func.func @qnet_kernel(%arg0: i32, %arg1: memref<8x16xbf16, #tpu.memory_space<vmem>>, %arg2: memref<16x128xbf16, #tpu.memory_space<vmem>>, %arg3: memref<2x128x128xbf16, #tpu.memory_space<vmem>>, %arg4: memref<8x128xf32, #tpu.memory_space<vmem>>, %arg5: memref<8x2xf32, #tpu.memory_space<vmem>>) attributes {dimension_semantics = [#tpu.dimension_semantics<parallel>], iteration_bounds = array<i64: 1>, scalar_prefetch = 0 : i64, scratch_operands = 0 : i64, tpu.core_type = #tpu.core_type<tc>, window_params = [{transform_indices = @transform_0, window_bounds = array<i64: 8, 16>}, {pipeline_mode = #tpu.pipeline_mode<synchronous>, transform_indices = @transform_1, window_bounds = array<i64: 16, 128>}, {pipeline_mode = #tpu.pipeline_mode<synchronous>, transform_indices = @transform_2, window_bounds = array<i64: 2, 128, 128>}, {pipeline_mode = #tpu.pipeline_mode<synchronous>, transform_indices = @transform_3, window_bounds = array<i64: 8, 128>}, {transform_indices = @transform_4, window_bounds = array<i64: 8, 2>}]} {
    %c0 = arith.constant 0 : index
    %c0_0 = arith.constant 0 : index
    %0 = vector.load %arg1[%c0, %c0_0] : memref<8x16xbf16, #tpu.memory_space<vmem>>, vector<8x16xbf16>
    %c0_1 = arith.constant 0 : index
    %c0_2 = arith.constant 0 : index
    %1 = vector.load %arg2[%c0_1, %c0_2] : memref<16x128xbf16, #tpu.memory_space<vmem>>, vector<16x128xbf16>
    %cst = arith.constant dense<0.000000e+00> : vector<8x128xf32>
    %2 = tpu.matmul %0, %1, %cst {dimension_numbers = #tpu.dot_dimension_numbers<[1], [0], [0], [1], [0, 0, 1, 1], [], []>} : vector<8x16xbf16>, vector<16x128xbf16>, vector<8x128xf32> -> vector<8x128xf32>
    %c0_3 = arith.constant 0 : index
    %c0_4 = arith.constant 0 : index
    %3 = vector.load %arg4[%c0_3, %c0_4] : memref<8x128xf32, #tpu.memory_space<vmem>>, vector<1x128xf32>
    %4 = vector.broadcast %3 : vector<1x128xf32> to vector<8x128xf32>
    %5 = arith.addf %2, %4 : vector<8x128xf32>
    %cst_5 = arith.constant 0.000000e+00 : f32
    %6 = vector.broadcast %cst_5 : f32 to vector<8x128xf32>
    %7 = arith.maximumf %5, %6 : vector<8x128xf32>
    %8 = arith.truncf %7 : vector<8x128xf32> to vector<8x128xbf16>
    %c0_6 = arith.constant 0 : index
    %c0_7 = arith.constant 0 : index
    %c0_8 = arith.constant 0 : index
    %9 = vector.load %arg3[%c0_6, %c0_7, %c0_8] : memref<2x128x128xbf16, #tpu.memory_space<vmem>>, vector<1x128x128xbf16>
    %10 = vector.shape_cast %9 : vector<1x128x128xbf16> to vector<128x128xbf16>
    %cst_9 = arith.constant dense<0.000000e+00> : vector<8x128xf32>
    %11 = tpu.matmul %8, %10, %cst_9 {dimension_numbers = #tpu.dot_dimension_numbers<[1], [0], [0], [1], [0, 0, 1, 1], [], []>} : vector<8x128xbf16>, vector<128x128xbf16>, vector<8x128xf32> -> vector<8x128xf32>
    %c1 = arith.constant 1 : index
    %c0_10 = arith.constant 0 : index
    %12 = vector.load %arg4[%c1, %c0_10] : memref<8x128xf32, #tpu.memory_space<vmem>>, vector<1x128xf32>
    %13 = vector.broadcast %12 : vector<1x128xf32> to vector<8x128xf32>
    %14 = arith.addf %11, %13 : vector<8x128xf32>
    %cst_11 = arith.constant 0.000000e+00 : f32
    %15 = vector.broadcast %cst_11 : f32 to vector<8x128xf32>
    %16 = arith.maximumf %14, %15 : vector<8x128xf32>
    %17 = arith.truncf %16 : vector<8x128xf32> to vector<8x128xbf16>
    %c1_12 = arith.constant 1 : index
    %c0_13 = arith.constant 0 : index
    %c0_14 = arith.constant 0 : index
    %18 = vector.load %arg3[%c1_12, %c0_13, %c0_14] : memref<2x128x128xbf16, #tpu.memory_space<vmem>>, vector<1x128x128xbf16>
    %19 = vector.shape_cast %18 : vector<1x128x128xbf16> to vector<128x128xbf16>
    %cst_15 = arith.constant dense<0.000000e+00> : vector<8x128xf32>
    %20 = tpu.matmul %17, %19, %cst_15 {dimension_numbers = #tpu.dot_dimension_numbers<[1], [0], [0], [1], [0, 0, 1, 1], [], []>} : vector<8x128xbf16>, vector<128x128xbf16>, vector<8x128xf32> -> vector<8x128xf32>
    %c2 = arith.constant 2 : index
    %c0_16 = arith.constant 0 : index
    %21 = vector.load %arg4[%c2, %c0_16] : memref<8x128xf32, #tpu.memory_space<vmem>>, vector<1x128xf32>
    %22 = vector.broadcast %21 : vector<1x128xf32> to vector<8x128xf32>
    %23 = arith.addf %20, %22 : vector<8x128xf32>
    %24 = vector.extract_strided_slice %23 {offsets = [0, 0], sizes = [8, 2], strides = [1, 1]} : vector<8x128xf32> to vector<8x2xf32>
    %c0_17 = arith.constant 0 : index
    %c0_18 = arith.constant 0 : index
    %25 = vector.load %arg5[%c0_17, %c0_18] : memref<8x2xf32, #tpu.memory_space<vmem>>, vector<8x2xf32>
    tpu.vector_store %arg5[%c0_17, %c0_18], %24 {strides = array<i32>} : memref<8x2xf32, #tpu.memory_space<vmem>>, vector<8x2xf32>,
    return
  }
  func.func @transform_0(%arg0: i32) -> (i32, i32) {
    %c0_i32 = arith.constant 0 : i32
    %c0_i32_0 = arith.constant 0 : i32
    return %arg0, %c0_i32 : i32, i32
  }
  func.func @transform_1(%arg0: i32) -> (i32, i32) {
    %c0_i32 = arith.constant 0 : i32
    %c0_i32_0 = arith.constant 0 : i32
    %c0_i32_1 = arith.constant 0 : i32
    return %c0_i32, %c0_i32_0 : i32, i32
  }
  func.func @transform_2(%arg0: i32) -> (i32, i32, i32) {
    %c0_i32 = arith.constant 0 : i32
    %c0_i32_0 = arith.constant 0 : i32
    %c0_i32_1 = arith.constant 0 : i32
    %c0_i32_2 = arith.constant 0 : i32
    return %c0_i32, %c0_i32_0, %c0_i32_1 : i32, i32, i32
  }
  func.func @transform_3(%arg0: i32) -> (i32, i32) {
    %c0_i32 = arith.constant 0 : i32
    %c0_i32_0 = arith.constant 0 : i32
    %c0_i32_1 = arith.constant 0 : i32
    return %c0_i32, %c0_i32_0 : i32, i32
  }
  func.func @transform_4(%arg0: i32) -> (i32, i32) {
    %c0_i32 = arith.constant 0 : i32
    %c0_i32_0 = arith.constant 0 : i32
    return %arg0, %c0_i32 : i32, i32
  }
}

</mosaic_0001>

<bundles_post_ra>
// kernel: qnet_forward.1
= control target key start
LH: loop header
LB: loop body
LE: loop exit
PB: predicated region body
PF: predicated region fallthrough
CT: control target
= control target key end

     0   :  { %9 = vsyncpa [#allocation3], 0  ;;  %s453_s15 = smov [#allocation2]   ;;  %s533_s0 = inlined_call_operand.vmem [shape: bf16[8,16], index: 0, kind: input, shape index: {}]   ;;  %s534_s1 = inlined_call_operand.vmem [shape: bf16[16,128], index: 1, kind: input, shape index: {}]   ;;  %s535_s2 = inlined_call_operand.hbm [shape: bf16[2,128,128], index: 2, kind: input, shape index: {}]   ;;  %s536_s3 = inlined_call_operand.vmem [shape: f32[8,128], index: 3, kind: input, shape index: {}]   ;;  %s537_s4 = inlined_call_operand.vmem [shape: f32[8,2], index: 4, kind: output, shape index: {}]  }
   0x1   :  { %s19_s16 = sshll.u32 %s453_s15, 4  ;;  %s429_s19 = scalar_lea.hbm %s535_s2, 2048  ;;  %s20_s16 = int_to_ptr.vmem [resolvable:$true] %s19_s16 }
   0x2   :  { %p430_p0 = scmp.ne.s32.totalorder %s535_s2, %s429_s19  ;;  %p433_p1 = scmp.lt.u32.totalorder %s429_s19, %s535_s2 }
   0x4   :  { %p435_p2 = pnand %p433_p1, %p430_p0 }
   0x6   :  { %438 = shalt.err (!%p435_p2)
}
   0x7   :  { %s439_s24 = scalar_lea.vmem %s20_s16, 2048  ;;  %p444_p4 = scmp.lt.s32.totalorder %s20_s16, %s20_s16 }
   0x8   :  { %p440_p3 = scmp.ne.s32.totalorder %s20_s16, %s439_s24  ;;  %p445_p5 = scmp.lt.s32.totalorder %s439_s24, %s439_s24 }
   0xa   :  { %p446_p6 = por %p445_p5, %p444_p4 }
   0xc   :  { %p447_p7 = pnand %p446_p6, %p440_p3 }
   0xe   :  { %450 = shalt.err (!%p447_p7)
}
   0xf   :  { %s454_s25 = smov 64   ;;  %s455_s26 = smov 4  }
  0x10   :  { %25 = dma.hbm_to_vmem [thread:$0]  %s535_s2, 2048, %s20_s16, [#allocation3], %s454_s25, %s454_s25, %s455_s26  }
  0x11   :  { %451 = dma.done.wait [#allocation3], 2048  }
  0x12   :  { %452 = vsyncadd [#allocation3], 4294965248  ;;  %v456_v0 = vmov 0.0   ;;  %vm457_vm0 = vmmov 0   ;;  %v412_v1 = vld [vmem:[%s534_s1] sm:$0xff]   ;;  %vm46_vm1 = vcmask 130048  }
  0x13   :  { %361 = vmatprep.subr.bf16.mxu0 %v456_v0  ;;  %363 = vmatprep.mubr.msk.bf16.mxu0 %vm457_vm0, %v456_v0  ;;  %v32_v2 = vld [vmem:[%s533_s0] sm:$0xf]  ;;  %v414_v4 = vld [vmem:[#allocation2 + $0x8] sm:$0xff]   ;;  %v415_v5 = vld [vmem:[#allocation2 + $0x10] sm:$0xff]   ;;  %vm313_vm2 = vcmask 15360  }
  0x14   :  { %367 = vmatprep.subr.bf16.mxu1 %v456_v0  ;;  %383 = vmatprep.mubr.msk.bf16.mxu1 %vm457_vm0, %v456_v0  ;;  %v413_v3 = vld [vmem:[#allocation2] sm:$0xff]   ;;  %v416_v6 = vld [vmem:[#allocation2 + $0x18] sm:$0xff]   ;;  %v418_v8 = vld [vmem:[#allocation2 + $0x28] sm:$0xff]  }
  0x15   :  { %362 = vmatpush3.bf16.msra.mxu0 %v412_v1  ;;  %368 = vmatpush3.bf16.msra.mxu1 %v413_v3  ;;  %v417_v7 = vld [vmem:[#allocation2 + $0x20] sm:$0xff]   ;;  %v419_v9 = vld [vmem:[#allocation2 + $0x30] sm:$0xff]   ;;  %v420_v10 = vld [vmem:[#allocation2 + $0x38] sm:$0xff]  }
  0x16   :  { %387 = vmatprep.subr.bf16.mxu0 %v456_v0  ;;  %369 = vmatprep.subr.bf16.mxu1 %v456_v0  ;;  %v421_v11 = vld [vmem:[#allocation2 + $0x40] sm:$0xff]   ;;  %v422_v12 = vld [vmem:[#allocation2 + $0x48] sm:$0xff]   ;;  %v423_v13 = vld [vmem:[#allocation2 + $0x50] sm:$0xff]  }
  0x17   :  { %v424_v14 = vld [vmem:[#allocation2 + $0x58] sm:$0xff]   ;;  %v425_v15 = vld [vmem:[#allocation2 + $0x60] sm:$0xff]   ;;  %v426_v16 = vld [vmem:[#allocation2 + $0x68] sm:$0xff]  }
  0x18   :  { %364 = vmatmul.mubr.msk.bf16.vlgmr.msra.gmra.mrb[0].mxu0 %vm46_vm1, %v32_v2  ;;  %v320_v17 = vld [vmem:[%s536_s3] ss:$0 sm:$0xff]  ;;  %v427_v25 = vld [vmem:[#allocation2 + $0x70] sm:$0xff]   ;;  %v428_v26 = vld [vmem:[#allocation2 + $0x78] sm:$0xff]  }
  0x19   :  { %403 = vmatprep.mubr.msk.bf16.mxu0 %vm457_vm0, %v456_v0  ;;  %370 = vmatpush3.bf16.msra.mxu1 %v414_v4  ;;  %v323_v27 = vld [vmem:[%s536_s3 + $0x1] ss:$0 sm:$0xff]  ;;  %v332_v35 = vld [vmem:[%s536_s3 + $0x2] ss:$0 sm:$0xff] }
  0x1a   :  { %371 = vmatprep.subr.bf16.mxu1 %v456_v0  ;;  %388 = vmatpush3.bf16.msra.mxu0 %v421_v11 }
  0x1b   :  { %389 = vmatprep.subr.bf16.mxu0 %v456_v0 }
  0x1d   :  { %372 = vmatpush3.bf16.msra.mxu1 %v415_v5 }
  0x1e   :  { %373 = vmatprep.subr.bf16.mxu1 %v456_v0  ;;  %390 = vmatpush3.bf16.msra.mxu0 %v422_v12 }
  0x1f   :  { %391 = vmatprep.subr.bf16.mxu0 %v456_v0 }
  0x21   :  { %374 = vmatpush3.bf16.msra.mxu1 %v416_v6 }
  0x22   :  { %375 = vmatprep.subr.bf16.mxu1 %v456_v0  ;;  %392 = vmatpush3.bf16.msra.mxu0 %v423_v13 }
  0x23   :  { %393 = vmatprep.subr.bf16.mxu0 %v456_v0 }
  0x25   :  { %376 = vmatpush3.bf16.msra.mxu1 %v417_v7 }
  0x26   :  { %377 = vmatprep.subr.bf16.mxu1 %v456_v0  ;;  %394 = vmatpush3.bf16.msra.mxu0 %v424_v14 }
  0x27   :  { %395 = vmatprep.subr.bf16.mxu0 %v456_v0 }
  0x29   :  { %378 = vmatpush3.bf16.msra.mxu1 %v418_v8 }
  0x2a   :  { %379 = vmatprep.subr.bf16.mxu1 %v456_v0  ;;  %396 = vmatpush3.bf16.msra.mxu0 %v425_v15 }
  0x2b   :  { %397 = vmatprep.subr.bf16.mxu0 %v456_v0 }
  0x2d   :  { %380 = vmatpush3.bf16.msra.mxu1 %v419_v9 }
  0x2e   :  { %381 = vmatprep.subr.bf16.mxu1 %v456_v0  ;;  %398 = vmatpush3.bf16.msra.mxu0 %v426_v16 }
  0x2f   :  { %399 = vmatprep.subr.bf16.mxu0 %v456_v0 }
  0x31   :  { %382 = vmatpush3.bf16.msra.mxu1 %v420_v10 }
  0x32   :  { %400 = vmatpush3.bf16.msra.mxu0 %v427_v25 }
  0x33   :  { %401 = vmatprep.subr.bf16.mxu0 %v456_v0 }
  0x36   :  { %402 = vmatpush3.bf16.msra.mxu0 %v428_v26 }
  0xeb   :  { %v84_v18 = vpop.f32.mrb[0].mxu0 }
  0xec   :  { %v85_v19 = vadd.f32 %v320_v17, %v84_v18  ;;  %v365_v20 = vpop.f32.mrb[1].mxu0 }
  0xed   :  { %v87_v21 = vpop.f32.mrb[2].mxu0 }
  0xee   :  { %v90_v22 = vmax.f32 %v85_v19, 0.0  ;;  %v366_v23 = vpop.f32.mrb[3].mxu0 }
  0xf0   :  { %v91_v24 = vpack.c.bf16 %v90_v22, %v90_v22 }
  0xf2   :  { %384 = vmatmul.mubr.bf16.vlgmr.msra.gmra.mrb[0].mxu1 %v91_v24 }
 0x1c5   :  { %v195_v28 = vpop.f32.mrb[0].mxu1 }
 0x1c6   :  { %v196_v29 = vadd.f32 %v323_v27, %v195_v28  ;;  %v385_v30 = vpop.f32.mrb[1].mxu1 }
 0x1c7   :  { %v198_v31 = vpop.f32.mrb[2].mxu1 }
 0x1c8   :  { %v201_v32 = vmax.f32 %v196_v29, 0.0  ;;  %v386_v33 = vpop.f32.mrb[3].mxu1 }
 0x1ca   :  { %v202_v34 = vpack.c.bf16 %v201_v32, %v201_v32 }
 0x1cc   :  { %404 = vmatmul.mubr.bf16.vlgmr.msra.gmra.mrb[4].mxu0 %v202_v34 }
 0x29f   :  { %v307_v36 = vpop.f32.mrb[4].mxu0 }
 0x2a0   :  { %v308_v37 = vadd.f32 %v332_v35, %v307_v36  ;;  %v405_v38 = vpop.f32.mrb[5].mxu0 }
 0x2a1   :  { %v310_v39 = vpop.f32.mrb[6].mxu0 }
 0x2a2   :  { %314 = vst.msk [vmem:[%s537_s4] sm:$0xff] %vm313_vm2, %v308_v37  ;;  %v406_v40 = vpop.f32.mrb[7].mxu0 }
 0x2a3   :  { %319 = vsyncpa [#allocation3], 1 }

</bundles_post_ra>
